<compile_context>
chip_gen: v6e
topology: v6e:2x2x1
jax: 0.10.0
libtpu: 0.0.40
codegen_flags: <defaults>
</compile_context>

<pallas_src>
import functools

import jax
import jax.numpy as jnp
from jax.experimental import pallas as pl
from jax.experimental.pallas import tpu as pltpu

HIDDEN_UNITS = 128
LANE = 128
SUBLANE = 8


def _noisy(h, mu_w, sig_w, eps_i, eps_o, mu_b, sig_b):
    # h: (B, K)   mu_w/sig_w: (K, N) [pre-transposed]   vectors: (1, K)/(1, N)
    y = jnp.dot(h, mu_w, preferred_element_type=jnp.float32)
    y = y + eps_o * jnp.dot(h * eps_i, sig_w, preferred_element_type=jnp.float32)
    return y + (sig_b * eps_o + mu_b)


def dqn_kernel(x_ref, w_ref, v_ref, out_ref):
    x = x_ref[...]                                   # (B_pad, 128)

    # Weight slab: 6 stacked (128, 128) blocks, [in, out] layout.
    mu1, sg1 = w_ref[0:128, :],   w_ref[128:256, :]
    mu2, sg2 = w_ref[256:384, :], w_ref[384:512, :]
    mu3, sg3 = w_ref[512:640, :], w_ref[640:768, :]

    # Vector slab: rows (eps_in, eps_out, mu_b, sig_b) per layer, padded to 128 lanes.
    ei1, eo1, mb1, sb1 = v_ref[0:1, :], v_ref[1:2, :], v_ref[2:3, :], v_ref[3:4, :]
    ei2, eo2, mb2, sb2 = v_ref[4:5, :], v_ref[5:6, :], v_ref[6:7, :], v_ref[7:8, :]
    ei3, eo3, mb3, sb3 = v_ref[8:9, :], v_ref[9:10, :], v_ref[10:11, :], v_ref[11:12, :]

    h1 = jnp.maximum(_noisy(x,  mu1, sg1, ei1, eo1, mb1, sb1), 0.0)
    h2 = jnp.maximum(_noisy(h1, mu2, sg2, ei2, eo2, mb2, sb2), 0.0)
    out = _noisy(h2, mu3, sg3, ei3, eo3, mb3, sb3)
    out_ref[...] = out.astype(out_ref.dtype)


def _pad_to(a, rows, cols):
    return jnp.pad(a, ((0, rows - a.shape[0]), (0, cols - a.shape[1])))


def _pad_vec(v, cols=LANE):
    v = v.reshape(1, -1).astype(jnp.float32)
    return jnp.pad(v, ((0, 0), (0, cols - v.shape[1])))


@functools.partial(jax.jit, static_argnames=("out_features",))
def dqn_forward(x, params, out_features):
    """params: 3 layer tuples (mu_w, sig_w, mu_b, sig_b, eps_in, eps_out),
    with mu_w / sig_w in torch nn.Linear layout [out_features, in_features]."""
    batch, in_features = x.shape
    b_pad = -(-batch // SUBLANE) * SUBLANE

    # Lane/sublane-dense padded input (zeros in padded columns/rows).
    x_p = jnp.pad(x.astype(jnp.float32),
                  ((0, b_pad - batch), (0, LANE - in_features)))

    # Pack weights (pre-transposed to [in, out], zero-padded to 128x128) and
    # all bias / epsilon vectors into two slabs -> 3 input DMAs total.
    w_rows = []
    v_rows = []
    for (mu_w, sig_w, mu_b, sig_b, eps_i, eps_o) in params:
        w_rows.append(_pad_to(mu_w.T.astype(jnp.float32), LANE, LANE))
        w_rows.append(_pad_to(sig_w.T.astype(jnp.float32), LANE, LANE))
        v_rows.extend([_pad_vec(eps_i), _pad_vec(eps_o),
                       _pad_vec(mu_b), _pad_vec(sig_b)])
    w_slab = jnp.concatenate(w_rows, axis=0)                       # (768, 128)
    v_slab = jnp.concatenate(v_rows + [jnp.zeros((4, LANE), jnp.float32)],
                             axis=0)                               # (16, 128)

    flops = 2 * b_pad * LANE * LANE * 2 * 3          # 2 matmuls per layer, 3 layers
    bytes_accessed = 4 * (x_p.size + w_slab.size + v_slab.size + b_pad * LANE)
    cost = pl.CostEstimate(flops=flops, transcendentals=0,
                           bytes_accessed=bytes_accessed)

    vmem = pl.BlockSpec(memory_space=pltpu.MemorySpace.VMEM)
    out = pl.pallas_call(
        dqn_kernel,
        out_shape=jax.ShapeDtypeStruct((b_pad, LANE), jnp.float32),
        in_specs=[vmem, vmem, vmem],
        out_specs=vmem,
        cost_estimate=cost,
    )(x_p, w_slab, v_slab)
    # TODO(synk): for large replay-buffer batches, add a ("parallel",) batch grid
    # axis (TILE_B, 128) to use both TensorCores on v7x; unnecessary at batch=2.
    return out[:batch, :out_features]


# ---------------------------------------------------------------------------
# Parameter / noise construction (mirrors NoisyLayer.__init__ + sample_noise)
# ---------------------------------------------------------------------------
def _noise_vector(key, features, bound):
    noise = jax.random.uniform(key, (features,), jnp.float32,
                               minval=-bound, maxval=bound)
    return jnp.sign(noise) * jnp.sqrt(jnp.abs(noise))


def make_noisy_layer_params(key, in_features, out_features, sigma=0.5):
    bound = in_features ** (-0.5)
    k_mu_b, k_mu_w, k_eps_i, k_eps_o = jax.random.split(key, 4)
    mu_b = jax.random.uniform(k_mu_b, (out_features,), jnp.float32,
                              minval=-bound, maxval=bound)
    sig_b = jnp.full((out_features,), sigma * bound, jnp.float32)
    mu_w = jax.random.uniform(k_mu_w, (out_features, in_features), jnp.float32,
                              minval=-bound, maxval=bound)
    sig_w = jnp.full((out_features, in_features), sigma * bound, jnp.float32)
    eps_in = _noise_vector(k_eps_i, in_features, bound)
    eps_out = _noise_vector(k_eps_o, out_features, bound)
    return (mu_w, sig_w, mu_b, sig_b, eps_in, eps_out)


def jax_reference(x, params):
    """Reference using the original W_eff materialization (torch semantics)."""
    h = x
    for i, (mu_w, sig_w, mu_b, sig_b, eps_i, eps_o) in enumerate(params):
        w = sig_w * jnp.outer(eps_o, eps_i) + mu_w
        b = sig_b * eps_o + mu_b
        h = h @ w.T + b
        if i < len(params) - 1:
            h = jnp.maximum(h, 0.0)
    return h


if __name__ == "__main__":
    key = jax.random.PRNGKey(0)
    k_x, k1, k2, k3 = jax.random.split(key, 4)

    batch = 2
    input_features = 16
    output_features = 4

    x = jax.random.normal(k_x, (batch, input_features), jnp.float32)

    params = (
        make_noisy_layer_params(k1, input_features, HIDDEN_UNITS),
        make_noisy_layer_params(k2, HIDDEN_UNITS, HIDDEN_UNITS),
        make_noisy_layer_params(k3, HIDDEN_UNITS, output_features),
    )

    out = dqn_forward(x, params, out_features=output_features)
    out = jax.block_until_ready(out)

    ref = jax_reference(x, params)
    assert out.shape == (batch, output_features)
    assert jnp.allclose(out, ref, atol=1e-4, rtol=1e-4), (
        float(jnp.max(jnp.abs(out - ref))))

    print("KERNEL_OK")
</pallas_src>

<mosaic_0001>
module attributes {stable_mosaic.version = 11 : i64} {
  func.func @dqn_kernel(%arg0: memref<8x128xf32, #tpu.memory_space<vmem>>, %arg1: memref<768x128xf32, #tpu.memory_space<vmem>>, %arg2: memref<16x128xf32, #tpu.memory_space<vmem>>, %arg3: memref<8x128xf32, #tpu.memory_space<vmem>>) attributes {dimension_semantics = [], scalar_prefetch = 0 : i64, scratch_operands = 0 : i64, tpu.core_type = #tpu.core_type<tc>} {
    %c0 = arith.constant 0 : index
    %c0_0 = arith.constant 0 : index
    %0 = vector.load %arg0[%c0, %c0_0] : memref<8x128xf32, #tpu.memory_space<vmem>>, vector<8x128xf32>
    %c0_1 = arith.constant 0 : index
    %c0_2 = arith.constant 0 : index
    %1 = vector.load %arg1[%c0_1, %c0_2] : memref<768x128xf32, #tpu.memory_space<vmem>>, vector<128x128xf32>
    %c128 = arith.constant 128 : index
    %c0_3 = arith.constant 0 : index
    %2 = vector.load %arg1[%c128, %c0_3] : memref<768x128xf32, #tpu.memory_space<vmem>>, vector<128x128xf32>
    %c256 = arith.constant 256 : index
    %c0_4 = arith.constant 0 : index
    %3 = vector.load %arg1[%c256, %c0_4] : memref<768x128xf32, #tpu.memory_space<vmem>>, vector<128x128xf32>
    %c384 = arith.constant 384 : index
    %c0_5 = arith.constant 0 : index
    %4 = vector.load %arg1[%c384, %c0_5] : memref<768x128xf32, #tpu.memory_space<vmem>>, vector<128x128xf32>
    %c512 = arith.constant 512 : index
    %c0_6 = arith.constant 0 : index
    %5 = vector.load %arg1[%c512, %c0_6] : memref<768x128xf32, #tpu.memory_space<vmem>>, vector<128x128xf32>
    %c640 = arith.constant 640 : index
    %c0_7 = arith.constant 0 : index
    %6 = vector.load %arg1[%c640, %c0_7] : memref<768x128xf32, #tpu.memory_space<vmem>>, vector<128x128xf32>
    %c0_8 = arith.constant 0 : index
    %c0_9 = arith.constant 0 : index
    %7 = vector.load %arg2[%c0_8, %c0_9] : memref<16x128xf32, #tpu.memory_space<vmem>>, vector<1x128xf32>
    %c1 = arith.constant 1 : index
    %c0_10 = arith.constant 0 : index
    %8 = vector.load %arg2[%c1, %c0_10] : memref<16x128xf32, #tpu.memory_space<vmem>>, vector<1x128xf32>
    %c2 = arith.constant 2 : index
    %c0_11 = arith.constant 0 : index
    %9 = vector.load %arg2[%c2, %c0_11] : memref<16x128xf32, #tpu.memory_space<vmem>>, vector<1x128xf32>
    %c3 = arith.constant 3 : index
    %c0_12 = arith.constant 0 : index
    %10 = vector.load %arg2[%c3, %c0_12] : memref<16x128xf32, #tpu.memory_space<vmem>>, vector<1x128xf32>
    %c4 = arith.constant 4 : index
    %c0_13 = arith.constant 0 : index
    %11 = vector.load %arg2[%c4, %c0_13] : memref<16x128xf32, #tpu.memory_space<vmem>>, vector<1x128xf32>
    %c5 = arith.constant 5 : index
    %c0_14 = arith.constant 0 : index
    %12 = vector.load %arg2[%c5, %c0_14] : memref<16x128xf32, #tpu.memory_space<vmem>>, vector<1x128xf32>
    %c6 = arith.constant 6 : index
    %c0_15 = arith.constant 0 : index
    %13 = vector.load %arg2[%c6, %c0_15] : memref<16x128xf32, #tpu.memory_space<vmem>>, vector<1x128xf32>
    %c7 = arith.constant 7 : index
    %c0_16 = arith.constant 0 : index
    %14 = vector.load %arg2[%c7, %c0_16] : memref<16x128xf32, #tpu.memory_space<vmem>>, vector<1x128xf32>
    %c8 = arith.constant 8 : index
    %c0_17 = arith.constant 0 : index
    %15 = vector.load %arg2[%c8, %c0_17] : memref<16x128xf32, #tpu.memory_space<vmem>>, vector<1x128xf32>
    %c9 = arith.constant 9 : index
    %c0_18 = arith.constant 0 : index
    %16 = vector.load %arg2[%c9, %c0_18] : memref<16x128xf32, #tpu.memory_space<vmem>>, vector<1x128xf32>
    %c10 = arith.constant 10 : index
    %c0_19 = arith.constant 0 : index
    %17 = vector.load %arg2[%c10, %c0_19] : memref<16x128xf32, #tpu.memory_space<vmem>>, vector<1x128xf32>
    %c11 = arith.constant 11 : index
    %c0_20 = arith.constant 0 : index
    %18 = vector.load %arg2[%c11, %c0_20] : memref<16x128xf32, #tpu.memory_space<vmem>>, vector<1x128xf32>
    %cst = arith.constant dense<0.000000e+00> : vector<8x128xf32>
    %19 = tpu.matmul %0, %1, %cst {dimension_numbers = #tpu.dot_dimension_numbers<[1], [0], [0], [1], [0, 0, 1, 1], [], []>} : vector<8x128xf32>, vector<128x128xf32>, vector<8x128xf32> -> vector<8x128xf32>
    %20 = vector.broadcast %7 : vector<1x128xf32> to vector<8x128xf32>
    %21 = arith.mulf %0, %20 : vector<8x128xf32>
    %cst_21 = arith.constant dense<0.000000e+00> : vector<8x128xf32>
    %22 = tpu.matmul %21, %2, %cst_21 {dimension_numbers = #tpu.dot_dimension_numbers<[1], [0], [0], [1], [0, 0, 1, 1], [], []>} : vector<8x128xf32>, vector<128x128xf32>, vector<8x128xf32> -> vector<8x128xf32>
    %23 = vector.broadcast %8 : vector<1x128xf32> to vector<8x128xf32>
    %24 = arith.mulf %23, %22 : vector<8x128xf32>
    %25 = arith.addf %19, %24 : vector<8x128xf32>
    %26 = arith.mulf %10, %8 : vector<1x128xf32>
    %27 = arith.addf %26, %9 : vector<1x128xf32>
    %28 = vector.broadcast %27 : vector<1x128xf32> to vector<8x128xf32>
    %29 = arith.addf %25, %28 : vector<8x128xf32>
    %cst_22 = arith.constant 0.000000e+00 : f32
    %30 = vector.broadcast %cst_22 : f32 to vector<8x128xf32>
    %31 = arith.maximumf %29, %30 : vector<8x128xf32>
    %cst_23 = arith.constant dense<0.000000e+00> : vector<8x128xf32>
    %32 = tpu.matmul %31, %3, %cst_23 {dimension_numbers = #tpu.dot_dimension_numbers<[1], [0], [0], [1], [0, 0, 1, 1], [], []>} : vector<8x128xf32>, vector<128x128xf32>, vector<8x128xf32> -> vector<8x128xf32>
    %33 = vector.broadcast %11 : vector<1x128xf32> to vector<8x128xf32>
    %34 = arith.mulf %31, %33 : vector<8x128xf32>
    %cst_24 = arith.constant dense<0.000000e+00> : vector<8x128xf32>
    %35 = tpu.matmul %34, %4, %cst_24 {dimension_numbers = #tpu.dot_dimension_numbers<[1], [0], [0], [1], [0, 0, 1, 1], [], []>} : vector<8x128xf32>, vector<128x128xf32>, vector<8x128xf32> -> vector<8x128xf32>
    %36 = vector.broadcast %12 : vector<1x128xf32> to vector<8x128xf32>
    %37 = arith.mulf %36, %35 : vector<8x128xf32>
    %38 = arith.addf %32, %37 : vector<8x128xf32>
    %39 = arith.mulf %14, %12 : vector<1x128xf32>
    %40 = arith.addf %39, %13 : vector<1x128xf32>
    %41 = vector.broadcast %40 : vector<1x128xf32> to vector<8x128xf32>
    %42 = arith.addf %38, %41 : vector<8x128xf32>
    %cst_25 = arith.constant 0.000000e+00 : f32
    %43 = vector.broadcast %cst_25 : f32 to vector<8x128xf32>
    %44 = arith.maximumf %42, %43 : vector<8x128xf32>
    %cst_26 = arith.constant dense<0.000000e+00> : vector<8x128xf32>
    %45 = tpu.matmul %44, %5, %cst_26 {dimension_numbers = #tpu.dot_dimension_numbers<[1], [0], [0], [1], [0, 0, 1, 1], [], []>} : vector<8x128xf32>, vector<128x128xf32>, vector<8x128xf32> -> vector<8x128xf32>
    %46 = vector.broadcast %15 : vector<1x128xf32> to vector<8x128xf32>
    %47 = arith.mulf %44, %46 : vector<8x128xf32>
    %cst_27 = arith.constant dense<0.000000e+00> : vector<8x128xf32>
    %48 = tpu.matmul %47, %6, %cst_27 {dimension_numbers = #tpu.dot_dimension_numbers<[1], [0], [0], [1], [0, 0, 1, 1], [], []>} : vector<8x128xf32>, vector<128x128xf32>, vector<8x128xf32> -> vector<8x128xf32>
    %49 = vector.broadcast %16 : vector<1x128xf32> to vector<8x128xf32>
    %50 = arith.mulf %49, %48 : vector<8x128xf32>
    %51 = arith.addf %45, %50 : vector<8x128xf32>
    %52 = arith.mulf %18, %16 : vector<1x128xf32>
    %53 = arith.addf %52, %17 : vector<1x128xf32>
    %54 = vector.broadcast %53 : vector<1x128xf32> to vector<8x128xf32>
    %55 = arith.addf %51, %54 : vector<8x128xf32>
    %c0_28 = arith.constant 0 : index
    %c0_29 = arith.constant 0 : index
    %56 = vector.load %arg3[%c0_28, %c0_29] : memref<8x128xf32, #tpu.memory_space<vmem>>, vector<8x128xf32>
    tpu.vector_store %arg3[%c0_28, %c0_29], %55 {strides = array<i32>} : memref<8x128xf32, #tpu.memory_space<vmem>>, vector<8x128xf32>,
    return
  }
}

</mosaic_0001>

<bundles_post_ra>
// kernel: dqn_forward.1
= control target key start
LH: loop header
LB: loop body
LE: loop exit
PB: predicated region body
PF: predicated region fallthrough
CT: control target
= control target key end

     0   :  { %v918_v0 = vmov 0.0   ;;  %vm919_vm0 = vmmov 0   ;;  %s1386_s1 = inlined_call_operand.vmem [shape: f32[768,128], index: 1, kind: input, shape index: {}]   ;;  %s1387_s0 = inlined_call_operand.vmem [shape: f32[8,128], index: 0, kind: input, shape index: {}]   ;;  %s1388_s2 = inlined_call_operand.vmem [shape: f32[16,128], index: 2, kind: input, shape index: {}]   ;;  %s1389_s3 = inlined_call_operand.vmem [shape: f32[8,128], index: 3, kind: output, shape index: {}]  }
   0x1   :  { %706 = vmatprep.subr.mxu0 %v918_v0  ;;  %741 = vmatprep.subr.mxu1 %v918_v0  ;;  %v46_v1 = vld [vmem:[%s1386_s1 + $0xf8] sm:$0xff]  ;;  %v45_v3 = vld [vmem:[%s1386_s1 + $0xf0] sm:$0xff]  ;;  %v44_v5 = vld [vmem:[%s1386_s1 + $0xe8] sm:$0xff] }
   0x2   :  { %v30_v2 = vld [vmem:[%s1386_s1 + $0x78] sm:$0xff]  ;;  %707 = vmatpush3.msra.mxu0 %v46_v1  ;;  %v29_v4 = vld [vmem:[%s1386_s1 + $0x70] sm:$0xff]  ;;  %v28_v6 = vld [vmem:[%s1386_s1 + $0x68] sm:$0xff]  ;;  %738 = vmatprep.mubr.msk.f32.mxu0 %vm919_vm0, %v918_v0 }
   0x3   :  { %742 = vmatpush3.msra.mxu1 %v30_v2  ;;  %708 = vmatprep.subr.mxu0 %v918_v0  ;;  %v43_v7 = vld [vmem:[%s1386_s1 + $0xe0] sm:$0xff]  ;;  %v42_v9 = vld [vmem:[%s1386_s1 + $0xd8] sm:$0xff]  ;;  %v41_v11 = vld [vmem:[%s1386_s1 + $0xd0] sm:$0xff] }
   0x4   :  { %743 = vmatprep.subr.mxu1 %v918_v0  ;;  %709 = vmatpush3.msra.mxu0 %v45_v3  ;;  %v27_v8 = vld [vmem:[%s1386_s1 + $0x60] sm:$0xff]  ;;  %v26_v10 = vld [vmem:[%s1386_s1 + $0x58] sm:$0xff]  ;;  %v25_v12 = vld [vmem:[%s1386_s1 + $0x50] sm:$0xff] }
   0x5   :  { %744 = vmatpush3.msra.mxu1 %v29_v4  ;;  %710 = vmatprep.subr.mxu0 %v918_v0  ;;  %v40_v13 = vld [vmem:[%s1386_s1 + $0xc8] sm:$0xff]  ;;  %v39_v15 = vld [vmem:[%s1386_s1 + $0xc0] sm:$0xff]  ;;  %v38_v17 = vld [vmem:[%s1386_s1 + $0xb8] sm:$0xff] }
   0x6   :  { %745 = vmatprep.subr.mxu1 %v918_v0  ;;  %711 = vmatpush3.msra.mxu0 %v44_v5  ;;  %v24_v14 = vld [vmem:[%s1386_s1 + $0x48] sm:$0xff]  ;;  %v23_v16 = vld [vmem:[%s1386_s1 + $0x40] sm:$0xff]  ;;  %v22_v18 = vld [vmem:[%s1386_s1 + $0x38] sm:$0xff]  ;;  %v198_v5 = vlaneseq }
   0x7   :  { %746 = vmatpush3.msra.mxu1 %v28_v6  ;;  %712 = vmatprep.subr.mxu0 %v918_v0  ;;  %v37_v19 = vld [vmem:[%s1386_s1 + $0xb0] sm:$0xff]  ;;  %v36_v21 = vld [vmem:[%s1386_s1 + $0xa8] sm:$0xff]  ;;  %v35_v23 = vld [vmem:[%s1386_s1 + $0xa0] sm:$0xff] }
   0x8   :  { %747 = vmatprep.subr.mxu1 %v918_v0  ;;  %713 = vmatpush3.msra.mxu0 %v43_v7  ;;  %v21_v20 = vld [vmem:[%s1386_s1 + $0x30] sm:$0xff]  ;;  %v20_v22 = vld [vmem:[%s1386_s1 + $0x28] sm:$0xff]  ;;  %v19_v24 = vld [vmem:[%s1386_s1 + $0x20] sm:$0xff]  ;;  %v199_v6 = vshrl.u32 %v198_v5, 7 }
   0x9   :  { %748 = vmatpush3.msra.mxu1 %v27_v8  ;;  %714 = vmatprep.subr.mxu0 %v918_v0  ;;  %v34_v25 = vld [vmem:[%s1386_s1 + $0x98] sm:$0xff]  ;;  %v33_v27 = vld [vmem:[%s1386_s1 + $0x90] sm:$0xff]  ;;  %v32_v29 = vld [vmem:[%s1386_s1 + $0x88] sm:$0xff] }
   0xa   :  { %749 = vmatprep.subr.mxu1 %v918_v0  ;;  %715 = vmatpush3.msra.mxu0 %v42_v9  ;;  %v18_v26 = vld [vmem:[%s1386_s1 + $0x18] sm:$0xff]  ;;  %v17_v28 = vld [vmem:[%s1386_s1 + $0x10] sm:$0xff]  ;;  %v16_v30 = vld [vmem:[%s1386_s1 + $0x8] sm:$0xff]  ;;  %v1218_v9 = vsub.s32 0, %v199_v6 }
   0xb   :  { %750 = vmatpush3.msra.mxu1 %v26_v10  ;;  %716 = vmatprep.subr.mxu0 %v918_v0  ;;  %v14_v31 = vld [vmem:[%s1387_s0] sm:$0xff]  ;;  %v62_v36 = vld [vmem:[%s1386_s1 + $0x178] sm:$0xff]  ;;  %v61_v38 = vld [vmem:[%s1386_s1 + $0x170] sm:$0xff] }
   0xc   :  { %751 = vmatprep.subr.mxu1 %v918_v0  ;;  %717 = vmatpush3.msra.mxu0 %v41_v11  ;;  %v601_v32 = vld [vmem:[%s1388_s2] ss:$0 sm:$0xff]  ;;  %v78_v37 = vld [vmem:[%s1386_s1 + $0x1f8] sm:$0xff]  ;;  %v77_v39 = vld [vmem:[%s1386_s1 + $0x1f0] sm:$0xff] }
   0xd   :  { %752 = vmatpush3.msra.mxu1 %v25_v12  ;;  %718 = vmatprep.subr.mxu0 %v918_v0  ;;  %v31_v33 = vld [vmem:[%s1386_s1 + $0x80] sm:$0xff]  ;;  %v127_v35 = vmul.f32 %v601_v32, %v14_v31  ;;  %v60_v40 = vld [vmem:[%s1386_s1 + $0x168] sm:$0xff]  ;;  %v58_v44 = vld [vmem:[%s1386_s1 + $0x158] sm:$0xff] }
   0xe   :  { %753 = vmatprep.subr.mxu1 %v918_v0  ;;  %719 = vmatpush3.msra.mxu0 %v40_v13  ;;  %v15_v34 = vld [vmem:[%s1386_s1] sm:$0xff]  ;;  %v76_v41 = vld [vmem:[%s1386_s1 + $0x1e8] sm:$0xff]  ;;  %v74_v45 = vld [vmem:[%s1386_s1 + $0x1d8] sm:$0xff] }
   0xf   :  { %754 = vmatpush3.msra.mxu1 %v24_v14  ;;  %720 = vmatprep.subr.mxu0 %v918_v0  ;;  %v59_v42 = vld [vmem:[%s1386_s1 + $0x160] sm:$0xff]  ;;  %v57_v46 = vld [vmem:[%s1386_s1 + $0x150] sm:$0xff]  ;;  %v56_v48 = vld [vmem:[%s1386_s1 + $0x148] sm:$0xff] }
  0x10   :  { %755 = vmatprep.subr.mxu1 %v918_v0  ;;  %721 = vmatpush3.msra.mxu0 %v39_v15  ;;  %v75_v43 = vld [vmem:[%s1386_s1 + $0x1e0] sm:$0xff]  ;;  %v73_v47 = vld [vmem:[%s1386_s1 + $0x1d0] sm:$0xff]  ;;  %v72_v49 = vld [vmem:[%s1386_s1 + $0x1c8] sm:$0xff] }
  0x11   :  { %756 = vmatpush3.msra.mxu1 %v23_v16  ;;  %722 = vmatprep.subr.mxu0 %v918_v0  ;;  %v55_v50 = vld [vmem:[%s1386_s1 + $0x140] sm:$0xff]  ;;  %v54_v52 = vld [vmem:[%s1386_s1 + $0x138] sm:$0xff]  ;;  %v53_v54 = vld [vmem:[%s1386_s1 + $0x130] sm:$0xff] }
  0x12   :  { %757 = vmatprep.subr.mxu1 %v918_v0  ;;  %723 = vmatpush3.msra.mxu0 %v38_v17  ;;  %v71_v51 = vld [vmem:[%s1386_s1 + $0x1c0] sm:$0xff]  ;;  %v70_v53 = vld [vmem:[%s1386_s1 + $0x1b8] sm:$0xff]  ;;  %v69_v55 = vld [vmem:[%s1386_s1 + $0x1b0] sm:$0xff] }
  0x13   :  { %758 = vmatpush3.msra.mxu1 %v22_v18  ;;  %724 = vmatprep.subr.mxu0 %v918_v0  ;;  %v52_v56 = vld [vmem:[%s1386_s1 + $0x128] sm:$0xff]  ;;  %v51_v58 = vld [vmem:[%s1386_s1 + $0x120] sm:$0xff]  ;;  %v50_v60 = vld [vmem:[%s1386_s1 + $0x118] sm:$0xff] }
  0x14   :  { %759 = vmatprep.subr.mxu1 %v918_v0  ;;  %725 = vmatpush3.msra.mxu0 %v37_v19  ;;  %v68_v57 = vld [vmem:[%s1386_s1 + $0x1a8] sm:$0xff]  ;;  %v67_v59 = vld [vmem:[%s1386_s1 + $0x1a0] sm:$0xff]  ;;  %v66_v61 = vld [vmem:[%s1386_s1 + $0x198] sm:$0xff] }
  0x15   :  { %760 = vmatpush3.msra.mxu1 %v21_v20  ;;  %726 = vmatprep.subr.mxu0 %v918_v0  ;;  %v49_v62 = vld [vmem:[%s1386_s1 + $0x110] sm:$0xff]  ;;  %v48_v1 = vld [vmem:[%s1386_s1 + $0x108] sm:$0xff]  ;;  %v47_v3 = vld [vmem:[%s1386_s1 + $0x100] sm:$0xff] }
  0x16   :  { %761 = vmatprep.subr.mxu1 %v918_v0  ;;  %727 = vmatpush3.msra.mxu0 %v36_v21  ;;  %v65_v63 = vld [vmem:[%s1386_s1 + $0x190] sm:$0xff]  ;;  %v64_v2 = vld [vmem:[%s1386_s1 + $0x188] sm:$0xff]  ;;  %v63_v4 = vld [vmem:[%s1386_s1 + $0x180] sm:$0xff] }
  0x17   :  { %762 = vmatpush3.msra.mxu1 %v20_v22  ;;  %728 = vmatprep.subr.mxu0 %v918_v0  ;;  %v112_v7 = vld [vmem:[%s1388_s2 + $0x1] sm:$0x1]  ;;  %v114_v8 = vld [vmem:[%s1388_s2 + $0x3] sm:$0x1]  ;;  %v113_v11 = vld [vmem:[%s1388_s2 + $0x2] sm:$0x1] }
  0x18   :  { %763 = vmatprep.subr.mxu1 %v918_v0  ;;  %729 = vmatpush3.msra.mxu0 %v35_v23  ;;  %v273_v10 = vmul.f32 %v114_v8, %v112_v7  ;;  %v201_v12 = vrot.slane %v112_v7, %v1218_v9  ;;  %v602_v22 = vld [vmem:[%s1388_s2 + $0x4] ss:$0 sm:$0xff]  ;;  %v603_v7 = vld [vmem:[%s1388_s2 + $0x8] ss:$0 sm:$0xff] }
  0x19   :  { %764 = vmatpush3.msra.mxu1 %v19_v24  ;;  %730 = vmatprep.subr.mxu0 %v918_v0  ;;  %v94_v24 = vld [vmem:[%s1386_s1 + $0x278] sm:$0xff]  ;;  %v107_v32 = vld [vmem:[%s1386_s1 + $0x2e0] sm:$0xff] }
  0x1a   :  { %765 = vmatprep.subr.mxu1 %v918_v0  ;;  %731 = vmatpush3.msra.mxu0 %v34_v25  ;;  %v274_v13 = vadd.f32 %v273_v10, %v113_v11  ;;  %v120_v11 = vld [vmem:[%s1388_s2 + $0x9] sm:$0x1] }
  0x1b   :  { %766 = vmatpush3.msra.mxu1 %v18_v26  ;;  %732 = vmatprep.subr.mxu0 %v918_v0  ;;  %v110_v26 = vld [vmem:[%s1386_s1 + $0x2f8] sm:$0xff] }
  0x1c   :  { %767 = vmatprep.subr.mxu1 %v918_v0  ;;  %733 = vmatpush3.msra.mxu0 %v33_v27  ;;  %v278_v17 = vrot.slane %v274_v13, %v1218_v9  ;;  %v93_v27 = vld [vmem:[%s1386_s1 + $0x270] sm:$0xff] }
  0x1d   :  { %768 = vmatpush3.msra.mxu1 %v17_v28  ;;  %734 = vmatprep.subr.mxu0 %v918_v0  ;;  %v109_v28 = vld [vmem:[%s1386_s1 + $0x2f0] sm:$0xff] }
  0x1e   :  { %769 = vmatprep.subr.mxu1 %v918_v0  ;;  %735 = vmatpush3.msra.mxu0 %v32_v29  ;;  %v92_v29 = vld [vmem:[%s1386_s1 + $0x268] sm:$0xff] }
  0x1f   :  { %770 = vmatpush3.msra.mxu1 %v16_v30  ;;  %736 = vmatprep.subr.mxu0 %v918_v0  ;;  %v108_v30 = vld [vmem:[%s1386_s1 + $0x2e8] sm:$0xff] }
  0x20   :  { %771 = vmatprep.subr.mxu1 %v918_v0  ;;  %737 = vmatpush3.msra.mxu0 %v31_v33  ;;  %v90_v33 = vld [vmem:[%s1386_s1 + $0x258] sm:$0xff] }
  0x21   :  { %772 = vmatpush3.msra.mxu1 %v15_v34  ;;  %773 = vmatprep.mubr.msk.f32.mxu1 %vm919_vm0, %v918_v0  ;;  %v106_v34 = vld [vmem:[%s1386_s1 + $0x2d8] sm:$0xff] }
  0x22   :  { %739 = vmatmul.mubr.f32.vlgmr.msra.gmra.mxu0 %v127_v35  ;;  %774 = vmatmul.mubr.f32.vlgmr.msra.gmra.mxu1 %v14_v31  ;;  %v91_v31 = vld [vmem:[%s1386_s1 + $0x260] sm:$0xff]  ;;  %v89_v35 = vld [vmem:[%s1386_s1 + $0x250] sm:$0xff] }
  0x23   :  { %811 = vmatprep.subr.mxu1 %v918_v0  ;;  %776 = vmatprep.subr.mxu0 %v918_v0 }
  0x24   :  { %812 = vmatpush3.msra.mxu1 %v62_v36  ;;  %777 = vmatpush3.msra.mxu0 %v78_v37  ;;  %v105_v36 = vld [vmem:[%s1386_s1 + $0x2d0] sm:$0xff]  ;;  %v88_v37 = vld [vmem:[%s1386_s1 + $0x248] sm:$0xff] }
  0x25   :  { %813 = vmatprep.subr.mxu1 %v918_v0  ;;  %778 = vmatprep.subr.mxu0 %v918_v0 }
  0x26   :  { %814 = vmatpush3.msra.mxu1 %v61_v38  ;;  %779 = vmatpush3.msra.mxu0 %v77_v39  ;;  %v104_v38 = vld [vmem:[%s1386_s1 + $0x2c8] sm:$0xff]  ;;  %v87_v39 = vld [vmem:[%s1386_s1 + $0x240] sm:$0xff] }
  0x27   :  { %815 = vmatprep.subr.mxu1 %v918_v0  ;;  %780 = vmatprep.subr.mxu0 %v918_v0 }
  0x28   :  { %816 = vmatpush3.msra.mxu1 %v60_v40  ;;  %781 = vmatpush3.msra.mxu0 %v76_v41  ;;  %v103_v40 = vld [vmem:[%s1386_s1 + $0x2c0] sm:$0xff]  ;;  %v86_v41 = vld [vmem:[%s1386_s1 + $0x238] sm:$0xff] }
  0x29   :  { %817 = vmatprep.subr.mxu1 %v918_v0  ;;  %782 = vmatprep.subr.mxu0 %v918_v0 }
  0x2a   :  { %818 = vmatpush3.msra.mxu1 %v59_v42  ;;  %783 = vmatpush3.msra.mxu0 %v75_v43  ;;  %v102_v42 = vld [vmem:[%s1386_s1 + $0x2b8] sm:$0xff]  ;;  %v85_v43 = vld [vmem:[%s1386_s1 + $0x230] sm:$0xff] }
  0x2b   :  { %819 = vmatprep.subr.mxu1 %v918_v0  ;;  %784 = vmatprep.subr.mxu0 %v918_v0 }
  0x2c   :  { %820 = vmatpush3.msra.mxu1 %v58_v44  ;;  %785 = vmatpush3.msra.mxu0 %v74_v45  ;;  %v101_v44 = vld [vmem:[%s1386_s1 + $0x2b0] sm:$0xff]  ;;  %v84_v45 = vld [vmem:[%s1386_s1 + $0x228] sm:$0xff] }
  0x2d   :  { %821 = vmatprep.subr.mxu1 %v918_v0  ;;  %786 = vmatprep.subr.mxu0 %v918_v0 }
  0x2e   :  { %822 = vmatpush3.msra.mxu1 %v57_v46  ;;  %787 = vmatpush3.msra.mxu0 %v73_v47  ;;  %v100_v46 = vld [vmem:[%s1386_s1 + $0x2a8] sm:$0xff]  ;;  %v83_v47 = vld [vmem:[%s1386_s1 + $0x220] sm:$0xff] }
  0x2f   :  { %823 = vmatprep.subr.mxu1 %v918_v0  ;;  %788 = vmatprep.subr.mxu0 %v918_v0 }
  0x30   :  { %824 = vmatpush3.msra.mxu1 %v56_v48  ;;  %789 = vmatpush3.msra.mxu0 %v72_v49  ;;  %v99_v48 = vld [vmem:[%s1386_s1 + $0x2a0] sm:$0xff]  ;;  %v82_v49 = vld [vmem:[%s1386_s1 + $0x218] sm:$0xff] }
  0x31   :  { %825 = vmatprep.subr.mxu1 %v918_v0  ;;  %790 = vmatprep.subr.mxu0 %v918_v0 }
  0x32   :  { %826 = vmatpush3.msra.mxu1 %v55_v50  ;;  %791 = vmatpush3.msra.mxu0 %v71_v51  ;;  %v98_v50 = vld [vmem:[%s1386_s1 + $0x298] sm:$0xff]  ;;  %v81_v51 = vld [vmem:[%s1386_s1 + $0x210] sm:$0xff] }
  0x33   :  { %827 = vmatprep.subr.mxu1 %v918_v0  ;;  %792 = vmatprep.subr.mxu0 %v918_v0 }
  0x34   :  { %828 = vmatpush3.msra.mxu1 %v54_v52  ;;  %793 = vmatpush3.msra.mxu0 %v70_v53  ;;  %v97_v52 = vld [vmem:[%s1386_s1 + $0x290] sm:$0xff]  ;;  %v80_v53 = vld [vmem:[%s1386_s1 + $0x208] sm:$0xff] }
  0x35   :  { %829 = vmatprep.subr.mxu1 %v918_v0  ;;  %794 = vmatprep.subr.mxu0 %v918_v0 }
  0x36   :  { %830 = vmatpush3.msra.mxu1 %v53_v54  ;;  %795 = vmatpush3.msra.mxu0 %v69_v55  ;;  %v96_v54 = vld [vmem:[%s1386_s1 + $0x288] sm:$0xff]  ;;  %v79_v55 = vld [vmem:[%s1386_s1 + $0x200] sm:$0xff] }
  0x37   :  { %831 = vmatprep.subr.mxu1 %v918_v0  ;;  %796 = vmatprep.subr.mxu0 %v918_v0 }
  0x38   :  { %832 = vmatpush3.msra.mxu1 %v52_v56  ;;  %843 = vmatprep.mubr.msk.f32.mxu1 %vm919_vm0, %v918_v0  ;;  %v95_v56 = vld [vmem:[%s1386_s1 + $0x280] sm:$0xff] }
  0x39   :  { %833 = vmatprep.subr.mxu1 %v918_v0  ;;  %808 = vmatprep.mubr.msk.f32.mxu0 %vm919_vm0, %v918_v0 }
  0x3a   :  { %797 = vmatpush3.msra.mxu0 %v68_v57  ;;  %834 = vmatpush3.msra.mxu1 %v51_v58  ;;  %v116_v57 = vld [vmem:[%s1388_s2 + $0x5] sm:$0x1]  ;;  %v118_v58 = vld [vmem:[%s1388_s2 + $0x7] sm:$0x1] }
  0x3b   :  { %798 = vmatprep.subr.mxu0 %v918_v0  ;;  %835 = vmatprep.subr.mxu1 %v918_v0 }
  0x3c   :  { %799 = vmatpush3.msra.mxu0 %v67_v59  ;;  %836 = vmatpush3.msra.mxu1 %v50_v60  ;;  %v431_v59 = vmul.f32 %v118_v58, %v116_v57  ;;  %v117_v60 = vld [vmem:[%s1388_s2 + $0x6] sm:$0x1] }
  0x3d   :  { %800 = vmatprep.subr.mxu0 %v918_v0  ;;  %837 = vmatprep.subr.mxu1 %v918_v0 }
  0x3e   :  { %801 = vmatpush3.msra.mxu0 %v66_v61  ;;  %838 = vmatpush3.msra.mxu1 %v49_v62  ;;  %v432_v61 = vadd.f32 %v431_v59, %v117_v60 }
  0x3f   :  { %802 = vmatprep.subr.mxu0 %v918_v0  ;;  %839 = vmatprep.subr.mxu1 %v918_v0 }
  0x40   :  { %803 = vmatpush3.msra.mxu0 %v65_v63  ;;  %840 = vmatpush3.msra.mxu1 %v48_v1 }
  0x41   :  { %804 = vmatprep.subr.mxu0 %v918_v0  ;;  %841 = vmatprep.subr.mxu1 %v918_v0 }
  0x42   :  { %805 = vmatpush3.msra.mxu0 %v64_v2  ;;  %842 = vmatpush3.msra.mxu1 %v47_v3  ;;  %v436_v3 = vrot.slane %v432_v61, %v1218_v9 }
  0x43   :  { %806 = vmatprep.subr.mxu0 %v918_v0  ;;  %881 = vmatprep.subr.mxu1 %v918_v0 }
  0x44   :  { %807 = vmatpush3.msra.mxu0 %v63_v4 }
  0x45   :  { %846 = vmatprep.subr.mxu0 %v918_v0 }
  0xe2   :  { %v194_v14 = vpop.f32.mrf.mxu0  ;;  %v269_v15 = vpop.f32.mrf.mxu1 }
  0xe3   :  { %v202_v16 = vmul.f32 %v201_v12, %v194_v14  ;;  %v122_v12 = vld [vmem:[%s1388_s2 + $0xb] sm:$0x1]  ;;  %v121_v14 = vld [vmem:[%s1388_s2 + $0xa] sm:$0x1] }
  0xe4   :  { %v740_v18 = vpop.f32.mrf.mxu0  ;;  %v775_v19 = vpop.f32.mrf.mxu1  ;;  %v589_v13 = vmul.f32 %v122_v12, %v120_v11 }
  0xe5   :  { %v270_v20 = vadd.f32 %v269_v15, %v202_v16  ;;  %v517_v15 = vrot.slane %v120_v11, %v1218_v9 }
  0xe6   :  { %v590_v16 = vadd.f32 %v589_v13, %v121_v14 }
  0xe7   :  { %v279_v21 = vadd.f32 %v278_v17, %v270_v20 }
  0xe9   :  { %v280_v23 = vmax.f32 %v279_v21, 0.0  ;;  %v594_v21 = vrot.slane %v590_v16, %v1218_v9 }
  0xeb   :  { %v285_v25 = vmul.f32 %v602_v22, %v280_v23  ;;  %844 = vmatmul.mubr.f32.vlgmr.msra.gmra.mxu1 %v280_v23 }
  0xec   :  { %882 = vmatpush3.msra.mxu1 %v94_v24  ;;  %913 = vmatprep.mubr.msk.f32.mxu1 %vm919_vm0, %v918_v0 }
  0xed   :  { %809 = vmatmul.mubr.f32.vlgmr.msra.gmra.mxu0 %v285_v25  ;;  %883 = vmatprep.subr.mxu1 %v918_v0 }
  0xee   :  { %847 = vmatpush3.msra.mxu0 %v110_v26  ;;  %884 = vmatpush3.msra.mxu1 %v93_v27 }
  0xef   :  { %848 = vmatprep.subr.mxu0 %v918_v0  ;;  %885 = vmatprep.subr.mxu1 %v918_v0 }
  0xf0   :  { %849 = vmatpush3.msra.mxu0 %v109_v28  ;;  %886 = vmatpush3.msra.mxu1 %v92_v29 }
  0xf1   :  { %850 = vmatprep.subr.mxu0 %v918_v0  ;;  %887 = vmatprep.subr.mxu1 %v918_v0 }
  0xf2   :  { %851 = vmatpush3.msra.mxu0 %v108_v30  ;;  %888 = vmatpush3.msra.mxu1 %v91_v31 }
  0xf3   :  { %852 = vmatprep.subr.mxu0 %v918_v0  ;;  %889 = vmatprep.subr.mxu1 %v918_v0 }
  0xf4   :  { %853 = vmatpush3.msra.mxu0 %v107_v32  ;;  %890 = vmatpush3.msra.mxu1 %v90_v33 }
  0xf5   :  { %854 = vmatprep.subr.mxu0 %v918_v0  ;;  %891 = vmatprep.subr.mxu1 %v918_v0 }
  0xf6   :  { %855 = vmatpush3.msra.mxu0 %v106_v34  ;;  %892 = vmatpush3.msra.mxu1 %v89_v35 }
  0xf7   :  { %856 = vmatprep.subr.mxu0 %v918_v0  ;;  %893 = vmatprep.subr.mxu1 %v918_v0 }
  0xf8   :  { %857 = vmatpush3.msra.mxu0 %v105_v36  ;;  %894 = vmatpush3.msra.mxu1 %v88_v37 }
  0xf9   :  { %858 = vmatprep.subr.mxu0 %v918_v0  ;;  %895 = vmatprep.subr.mxu1 %v918_v0 }
  0xfa   :  { %859 = vmatpush3.msra.mxu0 %v104_v38  ;;  %896 = vmatpush3.msra.mxu1 %v87_v39 }
  0xfb   :  { %860 = vmatprep.subr.mxu0 %v918_v0  ;;  %897 = vmatprep.subr.mxu1 %v918_v0 }
  0xfc   :  { %861 = vmatpush3.msra.mxu0 %v103_v40  ;;  %898 = vmatpush3.msra.mxu1 %v86_v41 }
  0xfd   :  { %862 = vmatprep.subr.mxu0 %v918_v0  ;;  %899 = vmatprep.subr.mxu1 %v918_v0 }
  0xfe   :  { %863 = vmatpush3.msra.mxu0 %v102_v42  ;;  %900 = vmatpush3.msra.mxu1 %v85_v43 }
  0xff   :  { %864 = vmatprep.subr.mxu0 %v918_v0  ;;  %901 = vmatprep.subr.mxu1 %v918_v0 }
 0x100   :  { %878 = vmatprep.mubr.msk.f32.mxu0 %vm919_vm0, %v918_v0  ;;  %865 = vmatpush3.msra.mxu0 %v101_v44 }
 0x101   :  { %902 = vmatpush3.msra.mxu1 %v84_v45  ;;  %866 = vmatprep.subr.mxu0 %v918_v0 }
 0x102   :  { %903 = vmatprep.subr.mxu1 %v918_v0  ;;  %867 = vmatpush3.msra.mxu0 %v100_v46 }
 0x103   :  { %904 = vmatpush3.msra.mxu1 %v83_v47  ;;  %868 = vmatprep.subr.mxu0 %v918_v0 }
 0x104   :  { %905 = vmatprep.subr.mxu1 %v918_v0  ;;  %869 = vmatpush3.msra.mxu0 %v99_v48 }
 0x105   :  { %906 = vmatpush3.msra.mxu1 %v82_v49  ;;  %870 = vmatprep.subr.mxu0 %v918_v0 }
 0x106   :  { %907 = vmatprep.subr.mxu1 %v918_v0  ;;  %871 = vmatpush3.msra.mxu0 %v98_v50 }
 0x107   :  { %908 = vmatpush3.msra.mxu1 %v81_v51  ;;  %872 = vmatprep.subr.mxu0 %v918_v0 }
 0x108   :  { %909 = vmatprep.subr.mxu1 %v918_v0  ;;  %873 = vmatpush3.msra.mxu0 %v97_v52 }
 0x109   :  { %910 = vmatpush3.msra.mxu1 %v80_v53  ;;  %874 = vmatprep.subr.mxu0 %v918_v0 }
 0x10a   :  { %911 = vmatprep.subr.mxu1 %v918_v0  ;;  %875 = vmatpush3.msra.mxu0 %v96_v54 }
 0x10b   :  { %912 = vmatpush3.msra.mxu1 %v79_v55  ;;  %876 = vmatprep.subr.mxu0 %v918_v0  ;;  %v359_v0 = vrot.slane %v116_v57, %v1218_v9 }
 0x10c   :  { %877 = vmatpush3.msra.mxu0 %v95_v56 }
 0x1ab   :  { %v427_v62 = vpop.f32.mrf.mxu1 }
 0x1ad   :  { %v352_v63 = vpop.f32.mrf.mxu0  ;;  %v845_v1 = vpop.f32.mrf.mxu1 }
 0x1ae   :  { %v360_v2 = vmul.f32 %v359_v0, %v352_v63 }
 0x1af   :  { %v810_v4 = vpop.f32.mrf.mxu0 }
 0x1b0   :  { %v428_v5 = vadd.f32 %v427_v62, %v360_v2 }
 0x1b2   :  { %v437_v6 = vadd.f32 %v436_v3, %v428_v5 }
 0x1b4   :  { %v438_v8 = vmax.f32 %v437_v6, 0.0 }
 0x1b6   :  { %v443_v10 = vmul.f32 %v603_v7, %v438_v8  ;;  %914 = vmatmul.mubr.f32.vlgmr.msra.gmra.mxu1 %v438_v8 }
 0x1b8   :  { %879 = vmatmul.mubr.f32.vlgmr.msra.gmra.mxu0 %v443_v10 }
 0x276   :  { %v585_v17 = vpop.f32.mrf.mxu1 }
 0x278   :  { %v510_v18 = vpop.f32.mrf.mxu0  ;;  %v915_v19 = vpop.f32.mrf.mxu1 }
 0x279   :  { %v518_v20 = vmul.f32 %v517_v15, %v510_v18 }
 0x27a   :  { %v880_v22 = vpop.f32.mrf.mxu0 }
 0x27b   :  { %v586_v23 = vadd.f32 %v585_v17, %v518_v20 }
 0x27d   :  { %v595_v24 = vadd.f32 %v594_v21, %v586_v23 }
 0x27f   :  { %596 = vst [vmem:[%s1389_s3] sm:$0xff] %v595_v24 }

</bundles_post_ra>
